<compile_context>
chip_gen: v5e
topology: v5e:2x2
jax: 0.10.0
libtpu: 0.0.40
codegen_flags: <defaults>
</compile_context>

<pallas_src>
import numpy as np
import jax
import jax.numpy as jnp
from jax.experimental import pallas as pl
from jax.experimental.pallas import tpu as pltpu


# ----------------------------------------------------------------------------
# Pallas kernel: full sequence, all nodes / layers fused, hidden carried in VMEM
# ----------------------------------------------------------------------------
def _dag_rnn_seq_kernel(h0_ref, x_ref, w0h_ref, w0x_ref, b0_ref, *refs):
    # refs = (w1, b1, ..., wL, bL, out_ref, h_scratch)
    out_ref, h_scr = refs[-2], refs[-1]
    wb = refs[:-2]
    n_rest = len(wb) // 2

    @pl.when(pl.program_id(0) == 0)
    def _():
        h_scr[...] = h0_ref[...]                       # seed the recurrence

    h = h_scr[...]                                     # (B_pad, S) f32 carry
    x = x_ref[0]                                       # (B_pad, IS) bf16

    # Layer 0: DAG gather folded into (W0_h, W0_x); no concat/mask/pad needed.
    acc = jnp.dot(h.astype(jnp.bfloat16), w0h_ref[...],
                  preferred_element_type=jnp.float32)
    acc = acc + jnp.dot(x, w0x_ref[...],
                        preferred_element_type=jnp.float32)
    acc = acc + b0_ref[...]                            # (B_pad, S*H) f32

    # Remaining layers: block-diagonal panels; ReLU between layers, none after
    # the last.  Dropout between layers is identity (eval / p=0).
    for l in range(n_rest):
        a = jnp.maximum(acc, 0.0).astype(jnp.bfloat16)
        acc = jnp.dot(a, wb[2 * l][...],
                      preferred_element_type=jnp.float32) + wb[2 * l + 1][...]

    # Fused residual: new_hidden = hidden + d_hidden, carried + emitted.
    new_h = h + acc                                    # (B_pad, S) f32
    h_scr[...] = new_h
    out_ref[0] = new_h
    # TODO(synk): when S >= 128 emit lane-dense (B_pad, G*out) node-group blocks.


def dag_rnn_run_sequence(packed, output_ind, inp_seq, hidden0):
    """Run the DAG_RNN over a sequence in one pallas_call.

    inp_seq: (T, B, IS) f32; hidden0: (B, S) f32.
    Returns (outputs (T, B, 1), hidden_seq (T, B, S))."""
    T, B, IS = inp_seq.shape
    S = packed["state_size"]
    SH = packed["w0h"].shape[1]

    B_pad = ((B + 15) // 16) * 16                      # bf16: 16 sublanes/vreg
    x = jnp.pad(inp_seq, ((0, 0), (0, B_pad - B), (0, 0))).astype(jnp.bfloat16)
    h0 = jnp.pad(hidden0, ((0, B_pad - B), (0, 0))).astype(jnp.float32)

    weight_args = [packed["w0h"], packed["w0x"], packed["b0"]]
    for w, b in zip(packed["rest_w"], packed["rest_b"]):
        weight_args += [w, b]

    # VMEM limit derived from the real footprint (resident weights + scratch +
    # double-buffered streamed blocks), not a magic constant.
    resident_bytes = (int(h0.size) * 4 + int(B_pad * S) * 4 +
                      sum(int(a.size) * a.dtype.itemsize for a in weight_args))
    streamed_bytes = 2 * (B_pad * IS * 2 + B_pad * S * 4)
    vmem_limit = 2 * (resident_bytes + streamed_bytes) + (8 << 20)

    flops_per_step = 2 * B_pad * (S * SH + IS * SH)
    for w in packed["rest_w"]:
        flops_per_step += 2 * B_pad * w.shape[0] * w.shape[1]
    bytes_accessed = (sum(int(a.size) * a.dtype.itemsize for a in weight_args)
                      + int(h0.size) * 4 + int(x.size) * 2 + T * B_pad * S * 4)

    in_specs = [
        pl.BlockSpec(memory_space=pltpu.MemorySpace.VMEM),      # h0 (resident)
        pl.BlockSpec((1, B_pad, IS), lambda t: (t, 0, 0)),      # per-step input
    ] + [pl.BlockSpec(memory_space=pltpu.MemorySpace.VMEM)] * len(weight_args)

    hidden_seq = pl.pallas_call(
        _dag_rnn_seq_kernel,
        out_shape=jax.ShapeDtypeStruct((T, B_pad, S), jnp.float32),
        grid=(T,),
        in_specs=in_specs,
        out_specs=pl.BlockSpec((1, B_pad, S), lambda t: (t, 0, 0)),
        scratch_shapes=[pltpu.VMEM((B_pad, S), jnp.float32)],
        compiler_params=pltpu.CompilerParams(
            dimension_semantics=("arbitrary",),      # time is a true recurrence
            vmem_limit_bytes=int(vmem_limit)),
        cost_estimate=pl.CostEstimate(flops=T * flops_per_step,
                                      transcendentals=0,
                                      bytes_accessed=int(bytes_accessed)),
    )(h0, x, *weight_args)

    hidden_seq = hidden_seq[:, :B, :]                  # drop padded batch rows
    outputs = hidden_seq[:, :, output_ind:output_ind + 1]
    return outputs, hidden_seq


# ----------------------------------------------------------------------------
# Parameter construction (mirrors DAG_RNN.__init__) + packing
# ----------------------------------------------------------------------------
def init_dag_rnn_params(key, dag, mlp_size, num_hidden_layers):
    S = len(dag)
    mlp_inputs = [dag[i][-1][0] for i in range(S)]
    layer_dims = [mlp_size] * num_hidden_layers + [1]
    n_layers = len(layer_dims)
    keys = jax.random.split(key, S * n_layers * 2).reshape(S, n_layers, 2, 2)

    per_node_w = [[] for _ in range(n_layers)]
    per_node_b = [[] for _ in range(n_layers)]
    for l in range(n_layers):
        out_l = layer_dims[l]
        for i in range(S):
            in_l = mlp_inputs[i] if l == 0 else layer_dims[l - 1]
            per_node_w[l].append(
                0.1 * jax.random.normal(keys[i, l, 0], (in_l, out_l),
                                        jnp.float32))
            per_node_b[l].append(
                0.1 * jax.random.normal(keys[i, l, 1], (1, out_l),
                                        jnp.float32))
    return per_node_w, per_node_b


def pack_dag_rnn_params(per_node_w, per_node_b, dag, input_size,
                        dtype=jnp.bfloat16):
    """Layer 0: fold the sparse DAG gather into scattered weights W0_h (S, S*H)
    and W0_x (IS, S*H).  Layers >= 1: block-diagonal (S*in, S*out) panels with
    zero off-diagonal blocks (exact).  Biases packed (1, S*out), kept f32."""
    S = len(dag)
    n_layers = len(per_node_w)
    layer_out = [per_node_w[l][0].shape[1] for l in range(n_layers)]
    H = layer_out[0]

    W0_h = np.zeros((S, S * H), np.float32)
    W0_x = np.zeros((input_size, S * H), np.float32)
    for i in range(S):
        w0 = np.asarray(per_node_w[0][i])              # (len(h)+len(x), H)
        h_idx, x_idx = dag[i][0], dag[i][1]
        for r, j in enumerate(h_idx):
            W0_h[j, i * H:(i + 1) * H] += w0[r]
        for r, j in enumerate(x_idx):
            W0_x[j, i * H:(i + 1) * H] += w0[len(h_idx) + r]
    b0 = np.concatenate([np.asarray(per_node_b[0][i]) for i in range(S)],
                        axis=1)

    rest_w, rest_b = [], []
    for l in range(1, n_layers):
        in_l, out_l = layer_out[l - 1], layer_out[l]
        W = np.zeros((S * in_l, S * out_l), np.float32)
        for i in range(S):
            W[i * in_l:(i + 1) * in_l,
              i * out_l:(i + 1) * out_l] = np.asarray(per_node_w[l][i])
        b = np.concatenate([np.asarray(per_node_b[l][i]) for i in range(S)],
                           axis=1)
        rest_w.append(jnp.asarray(W, dtype))
        rest_b.append(jnp.asarray(b, jnp.float32))

    return dict(w0h=jnp.asarray(W0_h, dtype), w0x=jnp.asarray(W0_x, dtype),
                b0=jnp.asarray(b0, jnp.float32),
                rest_w=rest_w, rest_b=rest_b, state_size=S)


# ----------------------------------------------------------------------------
# Pure-JAX single-step reference (mirrors the PyTorch forward exactly, f32)
# ----------------------------------------------------------------------------
def dag_rnn_reference(per_node_w, per_node_b, dag, output_ind, inp, hidden):
    S = len(dag)
    n_layers = len(per_node_w)
    d_hidden = []
    for i in range(S):
        h_idx = jnp.asarray(dag[i][0], dtype=jnp.int32)
        x_idx = jnp.asarray(dag[i][1], dtype=jnp.int32)
        h = jnp.concatenate([hidden[:, h_idx], inp[:, x_idx]], axis=-1)
        for l in range(n_layers):
            h = h @ per_node_w[l][i] + per_node_b[l][i]
            if l < n_layers - 1:
                h = jnp.maximum(h, 0.0)
        d_hidden.append(h)
    new_hidden = hidden + jnp.concatenate(d_hidden, axis=-1)
    return new_hidden[:, output_ind:output_ind + 1], new_hidden


if __name__ == "__main__":
    # DAG[i] = (hidden_indices, input_indices, (mlp_input_size,))
    DAG = [
        ([0],       [0, 1],  (3,)),
        ([0, 1],    [1],     (3,)),
        ([1, 2],    [0, 2],  (4,)),
        ([2, 3],    [1, 2],  (4,)),
    ]
    state_size = len(DAG)           # 4
    input_size = 3
    output_ind = 1
    mlp_size = 32
    num_hidden_layers = 2
    batch = 2
    seq_len = 6

    key = jax.random.PRNGKey(0)
    k_par, k_in, k_h = jax.random.split(key, 3)

    per_node_w, per_node_b = init_dag_rnn_params(
        k_par, DAG, mlp_size, num_hidden_layers)
    packed = pack_dag_rnn_params(per_node_w, per_node_b, DAG, input_size)

    inp_seq = jax.random.normal(k_in, (seq_len, batch, input_size), jnp.float32)
    # initHidden -> zeros; use a random hidden to exercise the residual path.
    hidden0 = jax.random.normal(k_h, (batch, state_size), jnp.float32)

    outputs, hidden_seq = dag_rnn_run_sequence(packed, output_ind,
                                               inp_seq, hidden0)
    outputs = jax.block_until_ready(outputs)
    hidden_seq = jax.block_until_ready(hidden_seq)

    # Reference: iterate the exact per-step module forward.
    ref_outs, ref_hs = [], []
    h = hidden0
    for t in range(seq_len):
        o, h = dag_rnn_reference(per_node_w, per_node_b, DAG, output_ind,
                                 inp_seq[t], h)
        ref_outs.append(o)
        ref_hs.append(h)
    ref_outs = jnp.stack(ref_outs)
    ref_hs = jnp.stack(ref_hs)

    assert outputs.shape == (seq_len, batch, 1)
    assert hidden_seq.shape == (seq_len, batch, state_size)
    # bf16 matmul operands with f32 accumulation / f32 hidden carry.
    assert jnp.allclose(hidden_seq, ref_hs, atol=2e-2, rtol=2e-2)
    assert jnp.allclose(outputs, ref_outs, atol=2e-2, rtol=2e-2)

    # Single step (T=1) == the module's forward(input, hidden).
    out1, hseq1 = dag_rnn_run_sequence(packed, output_ind, inp_seq[:1], hidden0)
    ref_o1, ref_h1 = dag_rnn_reference(per_node_w, per_node_b, DAG, output_ind,
                                       inp_seq[0], hidden0)
    out1 = jax.block_until_ready(out1)
    assert jnp.allclose(hseq1[0], ref_h1, atol=2e-2, rtol=2e-2)
    assert jnp.allclose(out1[0], ref_o1, atol=2e-2, rtol=2e-2)

    print("KERNEL_OK")
</pallas_src>

<mosaic_0001>
module attributes {stable_mosaic.version = 11 : i64} {
  func.func @_dag_rnn_seq_kernel(%arg0: i32, %arg1: memref<16x4xf32, #tpu.memory_space<vmem>>, %arg2: memref<1x16x3xbf16, #tpu.memory_space<vmem>>, %arg3: memref<4x128xbf16, #tpu.memory_space<vmem>>, %arg4: memref<3x128xbf16, #tpu.memory_space<vmem>>, %arg5: memref<1x128xf32, #tpu.memory_space<vmem>>, %arg6: memref<128x128xbf16, #tpu.memory_space<vmem>>, %arg7: memref<1x128xf32, #tpu.memory_space<vmem>>, %arg8: memref<128x4xbf16, #tpu.memory_space<vmem>>, %arg9: memref<1x4xf32, #tpu.memory_space<vmem>>, %arg10: memref<1x16x4xf32, #tpu.memory_space<vmem>>, %arg11: memref<16x4xf32, #tpu.memory_space<vmem>>) attributes {dimension_semantics = [#tpu.dimension_semantics<arbitrary>], iteration_bounds = array<i64: 6>, scalar_prefetch = 0 : i64, scratch_operands = 1 : i64, tpu.core_type = #tpu.core_type<tc>, window_params = [{pipeline_mode = #tpu.pipeline_mode<synchronous>, transform_indices = @transform_0, window_bounds = array<i64: 16, 4>}, {transform_indices = @transform_1, window_bounds = array<i64: 1, 16, 3>}, {pipeline_mode = #tpu.pipeline_mode<synchronous>, transform_indices = @transform_2, window_bounds = array<i64: 4, 128>}, {pipeline_mode = #tpu.pipeline_mode<synchronous>, transform_indices = @transform_3, window_bounds = array<i64: 3, 128>}, {pipeline_mode = #tpu.pipeline_mode<synchronous>, transform_indices = @transform_4, window_bounds = array<i64: 1, 128>}, {pipeline_mode = #tpu.pipeline_mode<synchronous>, transform_indices = @transform_5, window_bounds = array<i64: 128, 128>}, {pipeline_mode = #tpu.pipeline_mode<synchronous>, transform_indices = @transform_6, window_bounds = array<i64: 1, 128>}, {pipeline_mode = #tpu.pipeline_mode<synchronous>, transform_indices = @transform_7, window_bounds = array<i64: 128, 4>}, {pipeline_mode = #tpu.pipeline_mode<synchronous>, transform_indices = @transform_8, window_bounds = array<i64: 1, 4>}, {transform_indices = @transform_9, window_bounds = array<i64: 1, 16, 4>}]} {
    %c0_i32 = arith.constant 0 : i32
    %0 = arith.cmpi eq, %arg0, %c0_i32 : i32
    %1 = arith.extui %0 : i1 to i32
    %c0_i32_0 = arith.constant 0 : i32
    %2 = arith.cmpi ne, %1, %c0_i32_0 : i32
    scf.if %2 {
      %c0_29 = arith.constant 0 : index
      %c0_30 = arith.constant 0 : index
      %36 = vector.load %arg1[%c0_29, %c0_30] : memref<16x4xf32, #tpu.memory_space<vmem>>, vector<16x4xf32>
      %c0_31 = arith.constant 0 : index
      %c0_32 = arith.constant 0 : index
      %37 = vector.load %arg11[%c0_31, %c0_32] : memref<16x4xf32, #tpu.memory_space<vmem>>, vector<16x4xf32>
      tpu.vector_store %arg11[%c0_31, %c0_32], %36 {strides = array<i32>} : memref<16x4xf32, #tpu.memory_space<vmem>>, vector<16x4xf32>,
    } else {
    }
    %c0 = arith.constant 0 : index
    %c0_1 = arith.constant 0 : index
    %3 = vector.load %arg11[%c0, %c0_1] : memref<16x4xf32, #tpu.memory_space<vmem>>, vector<16x4xf32>
    %c0_2 = arith.constant 0 : index
    %c0_3 = arith.constant 0 : index
    %c0_4 = arith.constant 0 : index
    %4 = vector.load %arg2[%c0_2, %c0_3, %c0_4] : memref<1x16x3xbf16, #tpu.memory_space<vmem>>, vector<1x16x3xbf16>
    %5 = vector.shape_cast %4 : vector<1x16x3xbf16> to vector<16x3xbf16>
    %6 = arith.truncf %3 : vector<16x4xf32> to vector<16x4xbf16>
    %c0_5 = arith.constant 0 : index
    %c0_6 = arith.constant 0 : index
    %7 = vector.load %arg3[%c0_5, %c0_6] : memref<4x128xbf16, #tpu.memory_space<vmem>>, vector<4x128xbf16>
    %cst = arith.constant dense<0.000000e+00> : vector<16x128xf32>
    %8 = tpu.matmul %6, %7, %cst {dimension_numbers = #tpu.dot_dimension_numbers<[1], [0], [0], [1], [0, 0, 1, 1], [], []>} : vector<16x4xbf16>, vector<4x128xbf16>, vector<16x128xf32> -> vector<16x128xf32>
    %c0_7 = arith.constant 0 : index
    %c0_8 = arith.constant 0 : index
    %9 = vector.load %arg4[%c0_7, %c0_8] : memref<3x128xbf16, #tpu.memory_space<vmem>>, vector<3x128xbf16>
    %cst_9 = arith.constant dense<0.000000e+00> : vector<16x128xf32>
    %10 = tpu.matmul %5, %9, %cst_9 {dimension_numbers = #tpu.dot_dimension_numbers<[1], [0], [0], [1], [0, 0, 1, 1], [], []>} : vector<16x3xbf16>, vector<3x128xbf16>, vector<16x128xf32> -> vector<16x128xf32>
    %11 = arith.addf %8, %10 : vector<16x128xf32>
    %c0_10 = arith.constant 0 : index
    %c0_11 = arith.constant 0 : index
    %12 = vector.load %arg5[%c0_10, %c0_11] : memref<1x128xf32, #tpu.memory_space<vmem>>, vector<1x128xf32>
    %13 = vector.broadcast %12 : vector<1x128xf32> to vector<16x128xf32>
    %14 = arith.addf %11, %13 : vector<16x128xf32>
    %cst_12 = arith.constant 0.000000e+00 : f32
    %15 = vector.broadcast %cst_12 : f32 to vector<16x128xf32>
    %16 = arith.maximumf %14, %15 : vector<16x128xf32>
    %17 = arith.truncf %16 : vector<16x128xf32> to vector<16x128xbf16>
    %c0_13 = arith.constant 0 : index
    %c0_14 = arith.constant 0 : index
    %18 = vector.load %arg6[%c0_13, %c0_14] : memref<128x128xbf16, #tpu.memory_space<vmem>>, vector<128x128xbf16>
    %cst_15 = arith.constant dense<0.000000e+00> : vector<16x128xf32>
    %19 = tpu.matmul %17, %18, %cst_15 {dimension_numbers = #tpu.dot_dimension_numbers<[1], [0], [0], [1], [0, 0, 1, 1], [], []>} : vector<16x128xbf16>, vector<128x128xbf16>, vector<16x128xf32> -> vector<16x128xf32>
    %c0_16 = arith.constant 0 : index
    %c0_17 = arith.constant 0 : index
    %20 = vector.load %arg7[%c0_16, %c0_17] : memref<1x128xf32, #tpu.memory_space<vmem>>, vector<1x128xf32>
    %21 = vector.broadcast %20 : vector<1x128xf32> to vector<16x128xf32>
    %22 = arith.addf %19, %21 : vector<16x128xf32>
    %cst_18 = arith.constant 0.000000e+00 : f32
    %23 = vector.broadcast %cst_18 : f32 to vector<16x128xf32>
    %24 = arith.maximumf %22, %23 : vector<16x128xf32>
    %25 = arith.truncf %24 : vector<16x128xf32> to vector<16x128xbf16>
    %c0_19 = arith.constant 0 : index
    %c0_20 = arith.constant 0 : index
    %26 = vector.load %arg8[%c0_19, %c0_20] : memref<128x4xbf16, #tpu.memory_space<vmem>>, vector<128x4xbf16>
    %cst_21 = arith.constant dense<0.000000e+00> : vector<16x4xf32>
    %27 = tpu.matmul %25, %26, %cst_21 {dimension_numbers = #tpu.dot_dimension_numbers<[1], [0], [0], [1], [0, 0, 1, 1], [], []>} : vector<16x128xbf16>, vector<128x4xbf16>, vector<16x4xf32> -> vector<16x4xf32>
    %c0_22 = arith.constant 0 : index
    %c0_23 = arith.constant 0 : index
    %28 = vector.load %arg9[%c0_22, %c0_23] : memref<1x4xf32, #tpu.memory_space<vmem>>, vector<1x4xf32>
    %29 = vector.broadcast %28 : vector<1x4xf32> to vector<16x4xf32>
    %30 = arith.addf %27, %29 : vector<16x4xf32>
    %31 = arith.addf %3, %30 : vector<16x4xf32>
    %c0_24 = arith.constant 0 : index
    %c0_25 = arith.constant 0 : index
    %32 = vector.load %arg11[%c0_24, %c0_25] : memref<16x4xf32, #tpu.memory_space<vmem>>, vector<16x4xf32>
    tpu.vector_store %arg11[%c0_24, %c0_25], %31 {strides = array<i32>} : memref<16x4xf32, #tpu.memory_space<vmem>>, vector<16x4xf32>,
    %c0_26 = arith.constant 0 : index
    %c0_27 = arith.constant 0 : index
    %c0_28 = arith.constant 0 : index
    %33 = vector.load %arg10[%c0_26, %c0_27, %c0_28] : memref<1x16x4xf32, #tpu.memory_space<vmem>>, vector<1x16x4xf32>
    %34 = vector.shape_cast %33 : vector<1x16x4xf32> to vector<16x4xf32>
    %35 = vector.shape_cast %31 : vector<16x4xf32> to vector<1x16x4xf32>
    tpu.vector_store %arg10[%c0_26, %c0_27, %c0_28], %35 {strides = array<i32>} : memref<1x16x4xf32, #tpu.memory_space<vmem>>, vector<1x16x4xf32>,
    return
  }
  func.func @transform_0(%arg0: i32) -> (i32, i32) {
    %c0_i32 = arith.constant 0 : i32
    %c0_i32_0 = arith.constant 0 : i32
    %c0_i32_1 = arith.constant 0 : i32
    return %c0_i32, %c0_i32_0 : i32, i32
  }
  func.func @transform_1(%arg0: i32) -> (i32, i32, i32) {
    %c0_i32 = arith.constant 0 : i32
    %c0_i32_0 = arith.constant 0 : i32
    %c0_i32_1 = arith.constant 0 : i32
    return %arg0, %c0_i32, %c0_i32_0 : i32, i32, i32
  }
  func.func @transform_2(%arg0: i32) -> (i32, i32) {
    %c0_i32 = arith.constant 0 : i32
    %c0_i32_0 = arith.constant 0 : i32
    %c0_i32_1 = arith.constant 0 : i32
    return %c0_i32, %c0_i32_0 : i32, i32
  }
  func.func @transform_3(%arg0: i32) -> (i32, i32) {
    %c0_i32 = arith.constant 0 : i32
    %c0_i32_0 = arith.constant 0 : i32
    %c0_i32_1 = arith.constant 0 : i32
    return %c0_i32, %c0_i32_0 : i32, i32
  }
  func.func @transform_4(%arg0: i32) -> (i32, i32) {
    %c0_i32 = arith.constant 0 : i32
    %c0_i32_0 = arith.constant 0 : i32
    %c0_i32_1 = arith.constant 0 : i32
    return %c0_i32, %c0_i32_0 : i32, i32
  }
  func.func @transform_5(%arg0: i32) -> (i32, i32) {
    %c0_i32 = arith.constant 0 : i32
    %c0_i32_0 = arith.constant 0 : i32
    %c0_i32_1 = arith.constant 0 : i32
    return %c0_i32, %c0_i32_0 : i32, i32
  }
  func.func @transform_6(%arg0: i32) -> (i32, i32) {
    %c0_i32 = arith.constant 0 : i32
    %c0_i32_0 = arith.constant 0 : i32
    %c0_i32_1 = arith.constant 0 : i32
    return %c0_i32, %c0_i32_0 : i32, i32
  }
  func.func @transform_7(%arg0: i32) -> (i32, i32) {
    %c0_i32 = arith.constant 0 : i32
    %c0_i32_0 = arith.constant 0 : i32
    %c0_i32_1 = arith.constant 0 : i32
    return %c0_i32, %c0_i32_0 : i32, i32
  }
  func.func @transform_8(%arg0: i32) -> (i32, i32) {
    %c0_i32 = arith.constant 0 : i32
    %c0_i32_0 = arith.constant 0 : i32
    %c0_i32_1 = arith.constant 0 : i32
    return %c0_i32, %c0_i32_0 : i32, i32
  }
  func.func @transform_9(%arg0: i32) -> (i32, i32, i32) {
    %c0_i32 = arith.constant 0 : i32
    %c0_i32_0 = arith.constant 0 : i32
    %c0_i32_1 = arith.constant 0 : i32
    return %arg0, %c0_i32, %c0_i32_0 : i32, i32, i32
  }
}

</mosaic_0001>

<bundles_post_ra>
// kernel: tpu_custom_call.1
= control target key start
LH: loop header
LB: loop body
LE: loop exit
PB: predicated region body
PF: predicated region fallthrough
CT: control target
= control target key end

     0   :  { %s810_s30 = smov 0   ;;  %s913_s0 = inlined_call_operand.vmem [shape: f32[16,4], index: 0, kind: input, shape index: {}]   ;;  %s914_s1 = inlined_call_operand.vmem [shape: bf16[6,16,3], index: 1, kind: input, shape index: {}]   ;;  %s915_s2 = inlined_call_operand.vmem [shape: bf16[4,128], index: 2, kind: input, shape index: {}]   ;;  %s916_s3 = inlined_call_operand.vmem [shape: bf16[3,128], index: 3, kind: input, shape index: {}]   ;;  %s917_s4 = inlined_call_operand.vmem [shape: f32[1,128], index: 4, kind: input, shape index: {}]   ;;  %s918_s5 = inlined_call_operand.vmem [shape: bf16[128,128], index: 5, kind: input, shape index: {}]   ;;  %s919_s6 = inlined_call_operand.vmem [shape: f32[1,128], index: 6, kind: input, shape index: {}]   ;;  %s920_s7 = inlined_call_operand.vmem [shape: bf16[128,4], index: 7, kind: input, shape index: {}]   ;;  %s921_s8 = inlined_call_operand.vmem [shape: f32[1,4], index: 8, kind: input, shape index: {}]   ;;  %s922_s9 = inlined_call_operand.vmem [shape: f32[6,16,4], index: 9, kind: output, shape index: {}]  }
   0x1 LB: > { %s638_s10 = sadd.s32 4294967295, %s757_s30   ;;  %p642_p0 = scmp.ge.s32.totalorder %s757_s30, 1  ;;  %s757_s30 = sphi %s810_s30, %s19_s30  }
   0x2   : > { %p287_p1 = scmp.lt.s32.totalorder %s757_s30, 7 }
   0x4   : > { %p288_p2 = pnand %p642_p0, %p287_p1 }
   0x5   : > { %p323_p3 = scmp.lt.s32.totalorder (!%p288_p2), %s638_s10, 5  ;;  %p647_p4 = scmp.ne.s32.totalorder (!%p288_p2), %s638_s10, 0 }
   0x6   : > { %291 = sbr.rel (%p288_p2) target bundleno = 463 (0x1cf), region = 56 }
   0xb   : > { %s324_s11 = scalar_select %p323_p3, %s638_s10, 5 }
   0xc   : > { %337 = sbr.rel (%p647_p4) target bundleno = 20 (0x14), region = 60 }
   0xd   : > { %s720_s12 = sshll.u32 %s324_s11, 3  ;;  %s721_s13 = sshll.u32 %s324_s11, 4 }
   0xe   : > { %s327_s16 = scalar_lea.vmem %s914_s1, %s720_s12  ;;  %s824_s19 = scalar_lea.vmem %s922_s9, %s721_s13 }
  0x11   : > { %v338_v0 = vld [vmem:[%s913_s0] sm:$0xff]  ;;  %vm340_vm0 = vcmask 31744   ;;  %v339_v1 = vld [vmem:[%s913_s0 + $0x8] sm:$0xff] }
  0x12   : > { %341 = vst.msk [vmem:[#allocation2] sm:$0xff] %vm340_vm0, %v338_v0 }
  0x13   : > { %342 = vst.msk [vmem:[#allocation2 + $0x8] sm:$0xff] %vm340_vm0, %v339_v1 }
  0x14 PF: > { %v348_v2 = vld [vmem:[%s915_s2] sm:$0x3]  ;;  %vm360_vm1 = vcmask 1041408   ;;  %vm359_vm2 = vcmask 1040384   ;;  %v759_v7 = vmov 65535   ;;  %vm380_vm3 = vcmask 31744  }
  0x15   : > { %v385_v3 = vsel %vm360_vm1, %v348_v2, 0  ;;  %v349_v4 = vld [vmem:[%s916_s3] sm:$0x3]  ;;  %v361_v8 = vsel %vm359_vm2, 4294967295, %v759_v7  ;;  %v730_v10 = vld [vmem:[%s918_s5 + $0x38] sm:$0xff]  ;;  %v729_v13 = vld [vmem:[%s918_s5 + $0x30] sm:$0xff] }
  0x16   : > { %394 = vmatpush.bf16.msra.mxu1 %v385_v3  ;;  %v362_v11 = vsel %vm360_vm1, %v361_v8, 0  ;;  %478 = vmatpush.bf16.msra.mxu2 %v730_v10  ;;  %v722_v14 = vld [vmem:[%s327_s16] sm:$0xff]  ;;  %vm355_vm4 = vcmask 23552   ;;  %v728_v15 = vld [vmem:[%s918_s5 + $0x28] sm:$0xff]  ;;  %v726_v17 = vld [vmem:[%s918_s5 + $0x18] sm:$0xff] }
  0x17   : > { %v364_v12 = vand.u32 %v362_v11, %v349_v4  ;;  %v727_v16 = vld [vmem:[%s918_s5 + $0x20] sm:$0xff]  ;;  %v725_v18 = vld [vmem:[%s918_s5 + $0x10] sm:$0xff]  ;;  %v724_v19 = vld [vmem:[%s918_s5 + $0x8] sm:$0xff] }
  0x18   : > { %v723_v20 = vld [vmem:[%s918_s5] sm:$0xff]  ;;  %v738_v21 = vld [vmem:[%s920_s7 + $0x38] sm:$0xff]  ;;  %v737_v22 = vld [vmem:[%s920_s7 + $0x30] sm:$0xff] }
  0x19   : > { %v838_v5 = vld [vmem:[#allocation2] sm:$0xff]  ;;  %373 = vmatpush.bf16.msra.mxu0 %v364_v12  ;;  %563 = vmatpush.bf16.msra.mxu3 %v738_v21  ;;  %v736_v23 = vld [vmem:[%s920_s7 + $0x28] sm:$0xff]  ;;  %v734_v37 = vld [vmem:[%s920_s7 + $0x18] sm:$0xff] }
  0x1a   : > { %v840_v6 = vld [vmem:[#allocation2 + $0x8] sm:$0xff]  ;;  %479 = vmatpush.bf16.msra.mxu2 %v729_v13  ;;  %v735_v24 = vld [vmem:[%s920_s7 + $0x20] sm:$0xff]  ;;  %v733_v38 = vld [vmem:[%s920_s7 + $0x10] sm:$0xff] }
  0x1b   : > { %v347_v9 = vpack.c.bf16 %v840_v6, %v838_v5  ;;  %v748_v28 = vld [vmem:[%s917_s4] ss:$0 sm:$0xff]  ;;  %v732_v39 = vld [vmem:[%s920_s7 + $0x8] sm:$0xff] }
  0x1c   : > { %652 = vmatmul.msk.bf16.vlgmr.msra.gmra.mxu0 %vm355_vm4, %v722_v14  ;;  %v731_v40 = vld [vmem:[%s920_s7] sm:$0xff] }
  0x1d   : > { %653 = vmatmul.msk.bf16.vlgmr.msra.gmra.mxu1 %vm380_vm3, %v347_v9  ;;  %564 = vmatpush.bf16.msra.mxu3 %v737_v22  ;;  %v749_v42 = vld [vmem:[%s919_s6] ss:$0 sm:$0xff] }
  0x1e   : > { %480 = vmatpush.bf16.msra.mxu2 %v728_v15  ;;  %v750_v49 = vld [vmem:[%s921_s8] ss:$0 sm:$0xff] }
  0x21   : > { %565 = vmatpush.bf16.msra.mxu3 %v736_v23 }
  0x22   : > { %481 = vmatpush.bf16.msra.mxu2 %v727_v16 }
  0x25   : > { %566 = vmatpush.bf16.msra.mxu3 %v735_v24 }
  0x26   : > { %482 = vmatpush.bf16.msra.mxu2 %v726_v17 }
  0x29   : > { %567 = vmatpush.bf16.msra.mxu3 %v734_v37 }
  0x2a   : > { %483 = vmatpush.bf16.msra.mxu2 %v725_v18 }
  0x2d   : > { %568 = vmatpush.bf16.msra.mxu3 %v733_v38 }
  0x2e   : > { %484 = vmatpush.bf16.msra.mxu2 %v724_v19 }
  0x31   : > { %569 = vmatpush.bf16.msra.mxu3 %v732_v39 }
  0x32   : > { %485 = vmatpush.bf16.msra.mxu2 %v723_v20 }
  0x35   : > { %570 = vmatpush.bf16.msra.mxu3 %v731_v40 }
  0x99   : > { %v375_v26 = vpop.f32.mrf.mxu0 }
  0x9a   : > { %v396_v25 = vpop.f32.mrf.mxu1 }
  0x9b   : > { %v397_v27 = vadd.f32 %v396_v25, %v375_v26 }
  0x9d   : > { %v405_v31 = vadd.f32 %v748_v28, %v397_v27 }
  0x9f   : > { %v407_v34 = vmax.f32 %v405_v31, 0.0 }
  0xa1   : > { %v377_v30 = vpop.f32.mrf.mxu0 }
  0xa2   : > { %v398_v29 = vpop.f32.mrf.mxu1 }
  0xa3   : > { %v399_v32 = vadd.f32 %v398_v29, %v377_v30 }
  0xa5   : > { %v406_v33 = vadd.f32 %v748_v28, %v399_v32 }
  0xa7   : > { %v408_v35 = vmax.f32 %v406_v33, 0.0 }
  0xa9   : > { %v409_v36 = vpack.c.bf16 %v408_v35, %v407_v34 }
  0xab   : > { %486 = vmatmul.bf16.vlgmr.msra.gmra.mxu2 %v409_v36 }
 0x12e   : > { %v487_v41 = vpop.f32.mrf.mxu2 }
 0x12f   : > { %v488_v43 = vadd.f32 %v749_v42, %v487_v41 }
 0x131   : > { %v492_v46 = vmax.f32 %v488_v43, 0.0 }
 0x136   : > { %v489_v44 = vpop.f32.mrf.mxu2 }
 0x137   : > { %v490_v45 = vadd.f32 %v749_v42, %v489_v44 }
 0x139   : > { %v493_v47 = vmax.f32 %v490_v45, 0.0 }
 0x13b   : > { %v494_v48 = vpack.c.bf16 %v493_v47, %v492_v46 }
 0x13d   : > { %571 = vmatmul.bf16.vlgmr.msra.gmra.mxu3 %v494_v48 }
 0x1c0   : > { %v572_v50 = vpop.f32.mrf.mxu3 }
 0x1c1   : > { %v573_v51 = vadd.f32 %v750_v49, %v572_v50 }
 0x1c3   : > { %v577_v52 = vadd.f32 %v573_v51, %v838_v5 }
 0x1c5   : > { %579 = vst.msk [vmem:[#allocation2] sm:$0xff] %vm380_vm3, %v577_v52 }
 0x1c6   : > { %581 = vst.msk [vmem:[%s824_s19] sm:$0xff] %vm380_vm3, %v577_v52 }
 0x1c8   : > { %v574_v53 = vpop.f32.mrf.mxu3 }
 0x1c9   : > { %v575_v54 = vadd.f32 %v750_v49, %v574_v53 }
 0x1cb   : > { %v578_v55 = vadd.f32 %v575_v54, %v840_v6 }
 0x1cd   : > { %580 = vst.msk [vmem:[#allocation2 + $0x8] sm:$0xff] %vm380_vm3, %v578_v55 }
 0x1ce   : > { %582 = vst.msk [vmem:[%s824_s19 + $0x8] sm:$0xff] %vm380_vm3, %v578_v55 }
 0x1cf PF: > { %s19_s30 = sadd.s32 1, %s757_s30  }
 0x1d0   : > { %p16_p5 = scmp.ge.s32.totalorder %s19_s30, 8  }
 0x1d2   :  { %18 = sbr.rel (!%p16_p5) target bundleno = 1 (0x1), region = 90 }

</bundles_post_ra>
